<compile_context>
chip_gen: v7x
topology: tpu7x:2x2x1
jax: 0.10.0
libtpu: 0.0.40
codegen_flags: <defaults>
</compile_context>

<pallas_src>
import jax
import jax.numpy as jnp
from jax.experimental import pallas as pl
from jax.experimental.pallas import tpu as pltpu


def dss_linear_kernel(x_ref, wd_ref, w2_ref, b_ref, o_ref):
    # x_ref : (Bt, k, D) f32      wd_ref: (D, H) = W1 - W2 (compute dtype)
    # w2_ref: (D, H)  (compute dtype)   b_ref: (1, H) f32 = b1 + b2
    # o_ref : (Bt, k, H) f32
    Bt, k, D = x_ref.shape
    H = o_ref.shape[-1]

    x = x_ref[...]                                        # (Bt, k, D) f32

    # One big MXU matmul over all Bt*k rows (leading-dim reshape is free).
    y = jnp.dot(x.reshape(Bt * k, D).astype(wd_ref.dtype), wd_ref[...],
                preferred_element_type=jnp.float32)        # (Bt*k, H) f32

    # Per-group k-sum in f32, then a tiny (Bt, D) @ (D, H) matmul with W2.
    xs = jnp.sum(x, axis=1)                                # (Bt, D) f32
    ys = jnp.dot(xs.astype(w2_ref.dtype), w2_ref[...],
                 preferred_element_type=jnp.float32)       # (Bt, H) f32

    out = y.reshape(Bt, k, H) + (ys + b_ref[...])[:, None, :]
    o_ref[...] = out.astype(o_ref.dtype)


def dss_layer_linear(x, w1, b1, w2, b2, *, target_rows=256,
                     compute_dtype=jnp.float32):
    """DSSLayer 'linear' branch. x: (B, k, D); w1, w2: (D, H); b1, b2: (1, H)."""
    B, k, D = x.shape
    H = w1.shape[1]

    # Fuse parameters in the wrapper: out = x@(W1-W2) + (sum_k x)@W2 + (b1+b2).
    w_diff = (w1 - w2).astype(compute_dtype)
    w2c = w2.astype(compute_dtype)
    b_fused = (b1 + b2).astype(jnp.float32)                # (1, H)

    # Batch tile: Bt groups per grid step so Bt*k ~ target_rows (MXU-friendly M,
    # multiple of 128 when k divides target_rows).
    Bt = max(1, min(B, target_rows // max(k, 1)))
    num_blocks = pl.cdiv(B, Bt)
    B_pad = num_blocks * Bt
    if B_pad != B:
        x = jnp.pad(x, ((0, B_pad - B), (0, 0), (0, 0)))

    out = pl.pallas_call(
        dss_linear_kernel,
        out_shape=jax.ShapeDtypeStruct((B_pad, k, H), jnp.float32),
        grid_spec=pltpu.PrefetchScalarGridSpec(
            num_scalar_prefetch=0,
            grid=(num_blocks,),
            in_specs=[
                pl.BlockSpec((Bt, k, D), lambda b: (b, 0, 0)),   # x block
                pl.BlockSpec((D, H), lambda b: (0, 0)),          # W1 - W2
                pl.BlockSpec((D, H), lambda b: (0, 0)),          # W2
                pl.BlockSpec((1, H), lambda b: (0, 0)),          # b1 + b2
            ],
            out_specs=pl.BlockSpec((Bt, k, H), lambda b: (b, 0, 0)),
        ),
        compiler_params=pltpu.CompilerParams(
            dimension_semantics=("parallel",)),
    )(x, w_diff, w2c, b_fused)

    return out[:B]


def dss_layer_linear_ref(x, w1, b1, w2, b2):
    """Pure-JAX reference matching the PyTorch DSSLayer 'linear' branch exactly."""
    x_siam = jnp.einsum("bkd,dh->bkh", x, w1) + b1[None]
    x_sum = jnp.sum(x, axis=1, keepdims=True)
    x_agg = jnp.einsum("bkd,dh->bkh", x_sum - x, w2) + b2[None]
    return x_siam + x_agg


if __name__ == "__main__":
    # Small but MXU-friendly demo shapes: 2 grid steps of 32 groups * k=8 = 256 rows.
    B, k, D, H = 64, 8, 128, 128

    key = jax.random.PRNGKey(0)
    kx, kw1, kb1, kw2, kb2 = jax.random.split(key, 5)

    x = jax.random.normal(kx, (B, k, D), dtype=jnp.float32)
    # Deterministic synthetic "Linear" parameters (weights stored as (D, H)).
    w1 = jax.random.normal(kw1, (D, H), dtype=jnp.float32) / jnp.sqrt(D)
    b1 = jax.random.normal(kb1, (1, H), dtype=jnp.float32) * 0.01
    w2 = jax.random.normal(kw2, (D, H), dtype=jnp.float32) / jnp.sqrt(D)
    b2 = jax.random.normal(kb2, (1, H), dtype=jnp.float32) * 0.01

    ref = dss_layer_linear_ref(x, w1, b1, w2, b2)

    # f32 MXU operands: only fp re-association differs from the reference.
    out = jax.block_until_ready(dss_layer_linear(x, w1, b1, w2, b2))
    assert out.shape == (B, k, H)
    assert jnp.allclose(out, ref, atol=1e-4, rtol=1e-4), "f32 kernel mismatch"

    # bf16 MXU operands (f32 accumulate): ~2-4x MXU throughput, looser tolerance.
    out_bf16 = jax.block_until_ready(
        dss_layer_linear(x, w1, b1, w2, b2, compute_dtype=jnp.bfloat16))
    assert jnp.allclose(out_bf16, ref, atol=0.25, rtol=0.05), "bf16 kernel mismatch"

    print("KERNEL_OK")
</pallas_src>

<mosaic_0001>
module attributes {stable_mosaic.version = 11 : i64} {
  func.func @dss_linear_kernel(%arg0: i32, %arg1: memref<32x8x128xf32, #tpu.memory_space<vmem>>, %arg2: memref<128x128xf32, #tpu.memory_space<vmem>>, %arg3: memref<128x128xf32, #tpu.memory_space<vmem>>, %arg4: memref<1x128xf32, #tpu.memory_space<vmem>>, %arg5: memref<32x8x128xf32, #tpu.memory_space<vmem>>) attributes {dimension_semantics = [#tpu.dimension_semantics<parallel>], iteration_bounds = array<i64: 2>, scalar_prefetch = 0 : i64, scratch_operands = 0 : i64, tpu.core_type = #tpu.core_type<tc>, window_params = [{transform_indices = @transform_0, window_bounds = array<i64: 32, 8, 128>}, {pipeline_mode = #tpu.pipeline_mode<synchronous>, transform_indices = @transform_1, window_bounds = array<i64: 128, 128>}, {pipeline_mode = #tpu.pipeline_mode<synchronous>, transform_indices = @transform_2, window_bounds = array<i64: 128, 128>}, {pipeline_mode = #tpu.pipeline_mode<synchronous>, transform_indices = @transform_3, window_bounds = array<i64: 1, 128>}, {transform_indices = @transform_4, window_bounds = array<i64: 32, 8, 128>}]} {
    %c0 = arith.constant 0 : index
    %c0_0 = arith.constant 0 : index
    %c0_1 = arith.constant 0 : index
    %0 = vector.load %arg1[%c0, %c0_0, %c0_1] : memref<32x8x128xf32, #tpu.memory_space<vmem>>, vector<32x8x128xf32>
    %1 = vector.shape_cast %0 : vector<32x8x128xf32> to vector<256x128xf32>
    %c0_2 = arith.constant 0 : index
    %c0_3 = arith.constant 0 : index
    %2 = vector.load %arg2[%c0_2, %c0_3] : memref<128x128xf32, #tpu.memory_space<vmem>>, vector<128x128xf32>
    %cst = arith.constant dense<0.000000e+00> : vector<256x128xf32>
    %3 = tpu.matmul %1, %2, %cst {dimension_numbers = #tpu.dot_dimension_numbers<[1], [0], [0], [1], [0, 0, 1, 1], [], []>} : vector<256x128xf32>, vector<128x128xf32>, vector<256x128xf32> -> vector<256x128xf32>
    %cst_4 = arith.constant dense<0.000000e+00> : vector<32x128xf32>
    %4 = vector.multi_reduction <add>, %0, %cst_4 [1] : vector<32x8x128xf32> to vector<32x128xf32>
    %c0_5 = arith.constant 0 : index
    %c0_6 = arith.constant 0 : index
    %5 = vector.load %arg3[%c0_5, %c0_6] : memref<128x128xf32, #tpu.memory_space<vmem>>, vector<128x128xf32>
    %cst_7 = arith.constant dense<0.000000e+00> : vector<32x128xf32>
    %6 = tpu.matmul %4, %5, %cst_7 {dimension_numbers = #tpu.dot_dimension_numbers<[1], [0], [0], [1], [0, 0, 1, 1], [], []>} : vector<32x128xf32>, vector<128x128xf32>, vector<32x128xf32> -> vector<32x128xf32>
    %7 = vector.shape_cast %3 : vector<256x128xf32> to vector<32x8x128xf32>
    %c0_8 = arith.constant 0 : index
    %c0_9 = arith.constant 0 : index
    %8 = vector.load %arg4[%c0_8, %c0_9] : memref<1x128xf32, #tpu.memory_space<vmem>>, vector<1x128xf32>
    %9 = vector.broadcast %8 : vector<1x128xf32> to vector<32x128xf32>
    %10 = arith.addf %6, %9 : vector<32x128xf32>
    %11 = vector.shape_cast %10 : vector<32x128xf32> to vector<32x1x128xf32>
    %12 = vector.broadcast %11 : vector<32x1x128xf32> to vector<32x8x128xf32>
    %13 = arith.addf %7, %12 : vector<32x8x128xf32>
    %c0_10 = arith.constant 0 : index
    %c0_11 = arith.constant 0 : index
    %c0_12 = arith.constant 0 : index
    %14 = vector.load %arg5[%c0_10, %c0_11, %c0_12] : memref<32x8x128xf32, #tpu.memory_space<vmem>>, vector<32x8x128xf32>
    tpu.vector_store %arg5[%c0_10, %c0_11, %c0_12], %13 {strides = array<i32>} : memref<32x8x128xf32, #tpu.memory_space<vmem>>, vector<32x8x128xf32>,
    return
  }
  func.func @transform_0(%arg0: i32) -> (i32, i32, i32) {
    %c0_i32 = arith.constant 0 : i32
    %c0_i32_0 = arith.constant 0 : i32
    %c0_i32_1 = arith.constant 0 : i32
    return %arg0, %c0_i32, %c0_i32_0 : i32, i32, i32
  }
  func.func @transform_1(%arg0: i32) -> (i32, i32) {
    %c0_i32 = arith.constant 0 : i32
    %c0_i32_0 = arith.constant 0 : i32
    %c0_i32_1 = arith.constant 0 : i32
    return %c0_i32, %c0_i32_0 : i32, i32
  }
  func.func @transform_2(%arg0: i32) -> (i32, i32) {
    %c0_i32 = arith.constant 0 : i32
    %c0_i32_0 = arith.constant 0 : i32
    %c0_i32_1 = arith.constant 0 : i32
    return %c0_i32, %c0_i32_0 : i32, i32
  }
  func.func @transform_3(%arg0: i32) -> (i32, i32) {
    %c0_i32 = arith.constant 0 : i32
    %c0_i32_0 = arith.constant 0 : i32
    %c0_i32_1 = arith.constant 0 : i32
    return %c0_i32, %c0_i32_0 : i32, i32
  }
  func.func @transform_4(%arg0: i32) -> (i32, i32, i32) {
    %c0_i32 = arith.constant 0 : i32
    %c0_i32_0 = arith.constant 0 : i32
    %c0_i32_1 = arith.constant 0 : i32
    return %arg0, %c0_i32, %c0_i32_0 : i32, i32, i32
  }
}

</mosaic_0001>

<bundles_post_ra>
// kernel: tpu_custom_call.1
= control target key start
LH: loop header
LB: loop body
LE: loop exit
PB: predicated region body
PF: predicated region fallthrough
CT: control target
= control target key end

     0   :  { %9 = vsyncpa [#allocation3], 0  ;;  %s2562_s0 = inlined_call_operand.hbm [shape: f32[64,8,128], index: 0, kind: input, shape index: {}]   ;;  %s2563_s1 = inlined_call_operand.hbm [shape: f32[128,128], index: 1, kind: input, shape index: {}]   ;;  %s2564_s2 = inlined_call_operand.hbm [shape: f32[128,128], index: 2, kind: input, shape index: {}]   ;;  %s2565_s3 = inlined_call_operand.vmem [shape: f32[1,128], index: 3, kind: input, shape index: {}]   ;;  %s2566_s4 = inlined_call_operand.hbm [shape: f32[64,8,128], index: 4, kind: output, shape index: {}]  }
   0x1   :  { %11 = vsyncpa [#allocation3 + $0x1], 0 }
   0x2   :  { %12 = vsyncpa [#allocation6], 0 }
   0x3   :  { %13 = vsyncpa [#allocation4], 0 }
   0x4   :  { %15 = vsyncpa [#allocation4 + $0x1], 0  ;;  %s1956_s15 = smov 0   ;;  %s1958_s16 = smov 0  }
   0x5   :  { %s1960_s17 = smov 0   ;;  %s1962_s18 = smov 0  }
   0x6 LB: > { %s1977_s19 = sadd.s32 4294967295, %s1920_s18   ;;  %s1421_s20 = sadd.s32 4294967294, %s1920_s18   ;;  %s1920_s18 = sphi %s1962_s18, %s2586_s18   ;;  %s1916_s17 = sphi %s1960_s17, %s2585_s17   ;;  %s1912_s16 = sphi %s1958_s16, %s2584_s16   ;;  %s1908_s15 = sphi %s1956_s15, %s2583_s15  }
   0x7   : > { %p41_p0 = scmp.ne.s32.totalorder %s1912_s16, %s1908_s15  ;;  %p2567_p1 = scmp.eq.s32.totalorder %s1977_s19, 0 }
   0x8   : > { %p134_p3 = scmp.eq.s32.totalorder %s1421_s20, 1  ;;  %p1422_p5 = scmp.ge.s32.totalorder %s1920_s18, 1 }
   0x9   : > { %p1986_p4 = por %p2567_p1, %p41_p0  ;;  %p141_p7 = scmp.lt.s32.totalorder %s1920_s18, 3 }
   0xa   : > { %p1991_p6 = por %p134_p3, %p41_p0  ;;  %s1922_s24 = smov [#allocation5]  }
   0xb   : > { %s2570_s21 = scalar_select %p1986_p4, 1, 0 }
   0xc   : > { %s2571_s22 = scalar_select %p1991_p6, 1, 0 }
   0xd   : > { %p1996_p8 = pnand %p1422_p5, %p141_p7  ;;  %s153_s25 = sshll.u32 %s1922_s24, 4  ;;  %s2000_s25 = int_to_ptr.vmem [resolvable:$true] %s153_s25 }
   0xe   : > { %s1923_s27 = smov [#allocation7]   ;;  %s1764_s5 = scalar_lea.hbm %s2563_s1, 2048 }
   0xf   : > { %p1704_p9 = pneg %p1996_p8  ;;  %s166_s28 = sshll.u32 %s1923_s27, 4  ;;  %s2011_s28 = int_to_ptr.vmem [resolvable:$true] %s166_s28 }
  0x10   : > { %p1765_p12 = scmp.ne.s32.totalorder %s2563_s1, %s1764_s5  ;;  %p1771_p5 = scmp.lt.u32.totalorder %s1764_s5, %s2563_s1 }
  0x11   : > { %p2007_p11 = pnand %p1704_p9, %p2567_p1 }
  0x13   : > { %p1766_p13 = pneg %p2007_p11 }
  0x15   : > { %p1767_p0 = pnand %p1766_p13, %p1765_p12 }
  0x17   : > { %p1768_p3 = pneg %p1767_p0 }
  0x19   : > { %p1773_p7 = pnand %p1771_p5, %p1768_p3 }
  0x1b   : > { %1776 = shalt.err (!%p1773_p7)
}
  0x1c   : > { %s1777_s10 = scalar_lea.vmem %s2000_s25, 2048  ;;  %p1785_p2 = scmp.lt.s32.totalorder %s2000_s25, %s2000_s25 }
  0x1d   : > { %p1778_p9 = scmp.ne.s32.totalorder %s2000_s25, %s1777_s10  ;;  %p1786_p12 = scmp.lt.s32.totalorder %s1777_s10, %s1777_s10 }
  0x1f   : > { %p1780_p10 = pnand %p1778_p9, %p1766_p13  ;;  %p1787_p0 = por %p1786_p12, %p1785_p2 }
  0x21   : > { %p1781_p1 = pneg %p1780_p10 }
  0x23   : > { %p1788_p6 = pnand %p1787_p0, %p1781_p1 }
  0x25   : > { %1791 = shalt.err (!%p1788_p6)
}
  0x26   : > { %s1924_s11 = smov 128   ;;  %s1925_s12 = smov 8  }
  0x27   : > { %1707 = dma.hbm_to_vmem [thread:$0]  (!%p2007_p11), %s2563_s1, 2048, %s2000_s25, [#allocation6], %s1924_s11, %s1924_s11, %s1925_s12  }
  0x28   : > { %s1792_s27 = scalar_lea.hbm %s2564_s2, 2048 }
  0x29   : > { %p1793_p1 = scmp.ne.s32.totalorder %s2564_s2, %s1792_s27  ;;  %p1799_p10 = scmp.lt.u32.totalorder %s1792_s27, %s2564_s2 }
  0x2b   : > { %p1795_p2 = pnand %p1793_p1, %p1766_p13 }
  0x2d   : > { %p1796_p6 = pneg %p1795_p2 }
  0x2f   : > { %p1801_p3 = pnand %p1799_p10, %p1796_p6 }
  0x31   : > { %1804 = shalt.err (!%p1801_p3)
}
  0x32   : > { %s1805_s25 = scalar_lea.vmem %s2011_s28, 2048  ;;  %p1813_p12 = scmp.lt.s32.totalorder %s2011_s28, %s2011_s28 }
  0x33   : > { %p1806_p5 = scmp.ne.s32.totalorder %s2011_s28, %s1805_s25  ;;  %p1814_p0 = scmp.lt.s32.totalorder %s1805_s25, %s1805_s25 }
  0x35   : > { %p1808_p7 = pnand %p1806_p5, %p1766_p13  ;;  %p1815_p1 = por %p1814_p0, %p1813_p12 }
  0x37   : > { %p1809_p9 = pneg %p1808_p7 }
  0x39   : > { %p1816_p2 = pnand %p1815_p1, %p1809_p9 }
  0x3b   : > { %1819 = shalt.err (!%p1816_p2)
}
  0x3c   : > { %1710 = dma.hbm_to_vmem [thread:$0]  (!%p2007_p11), %s2564_s2, 2048, %s2011_s28, [#allocation6], %s1924_s11, %s1924_s11, %s1925_s12  }
  0x3d   : > { %s2072_s26 = sadd.s32 1, %s1920_s18   ;;  %s28_s9 = sadd.s32 1, %s1916_s17 }
  0x3e   : > { %s25_s10 = ssub.s32 %s1920_s18, %s2072_s26  ;;  %p35_p13 = scmp.ne.s32.totalorder %s1916_s17, %s1912_s16 }
  0x3f   : > { %p26_p6 = scmp.eq.s32.totalorder %s25_s10, 0  ;;  %p36_p10 = scmp.eq.s32.totalorder %s1920_s18, 0 }
  0x40   : > { %p2574_p3 = scmp.eq.s32.totalorder %s1977_s19, 1  ;;  %p1721_p7 = scmp.lt.s32.totalorder %s1920_s18, 2 }
  0x41   : > { %s2088_s14 = scalar_select %p26_p6, %s1916_s17, %s28_s9  }
  0x42   : > { %p2082_p5 = por %p2574_p3, %p35_p13  ;;  %p37_p9 = por %p36_p10, %p35_p13 }
  0x43   : > { %s183_s20 = sand.u32 1, %s1916_s17   ;;  %s1440_s28 = sshll.u32 %s1920_s18, 12 }
  0x44   : > { %s2575_s13 = scalar_select %p2082_p5, 1, 0 }
  0x45   : > { %s1426_s24 = sshll.u32 %s183_s20, 8  ;;  %s2095_s30 = scalar_lea.hbm %s2562_s0, %s1440_s28 }
  0x46   : > { %s187_s5 = scalar_lea.vmem [#allocation2], %s1426_s24  ;;  %p2099_p11 = pnand %p1721_p7, %p37_p9 }
  0x47   : > { %s194_s6 = sshll.u32 %s187_s5, 4  ;;  %s2103_s7 = scalar_lea.sflag [#allocation3], %s183_s20  ;;  %s2097_s6 = int_to_ptr.vmem [resolvable:$true] %s194_s6 }
  0x48   : > { %s1820_s8 = scalar_lea.hbm %s2095_s30, 4096  ;;  %p1822_p0 = pneg %p2099_p11 }
  0x49   : > { %p1821_p12 = scmp.ne.s32.totalorder %s2095_s30, %s1820_s8  ;;  %s1825_s24 = scalar_lea.hbm %s2562_s0, 8192 }
  0x4a   : > { %p1826_p13 = scmp.lt.u32.totalorder %s2095_s30, %s2562_s0  ;;  %p1827_p6 = scmp.lt.u32.totalorder %s1825_s24, %s1820_s8 }
  0x4b   : > { %p1823_p1 = pnand %p1822_p0, %p1821_p12  ;;  %p1829_p3 = scmp.lt.u32.totalorder %s1820_s8, %s2095_s30 }
  0x4c   : > { %p1828_p10 = por %p1827_p6, %p1826_p13 }
  0x4d   : > { %p1824_p2 = pneg %p1823_p1 }
  0x4e   : > { %p1830_p7 = por %p1829_p3, %p1828_p10 }
  0x50   : > { %p1831_p9 = pnand %p1830_p7, %p1824_p2 }
  0x52   : > { %1834 = shalt.err (!%p1831_p9)
}
  0x53   : > { %s1835_s20 = scalar_lea.vmem %s2097_s6, 4096  ;;  %s1926_s29 = smov [#allocation2]  }
  0x54   : > { %p1836_p12 = scmp.ne.s32.totalorder %s2097_s6, %s1835_s20  ;;  %s1840_s5 = sshll.u32 %s1926_s29, 4  ;;  %s1841_s5 = int_to_ptr.vmem [resolvable:$false] %s1840_s5 }
  0x55   : > { %s1842_s9 = scalar_lea.vmem %s1841_s5, 8192  ;;  %p1843_p4 = scmp.lt.s32.totalorder %s2097_s6, %s1841_s5 }
  0x56   : > { %p1838_p1 = pnand %p1836_p12, %p1822_p0  ;;  %p1844_p13 = scmp.lt.s32.totalorder %s1842_s9, %s1835_s20 }
  0x58   : > { %p1839_p5 = pneg %p1838_p1  ;;  %p1845_p6 = por %p1844_p13, %p1843_p4 }
  0x5a   : > { %p1846_p10 = pnand %p1845_p6, %p1839_p5 }
  0x5c   : > { %1849 = shalt.err (!%p1846_p10)
}
  0x5d   : > { %1714 = dma.hbm_to_vmem [thread:$0]  (!%p2099_p11), %s2095_s30, 4096, %s2097_s6, %s2103_s7, %s1924_s11, %s1924_s11, %s1925_s12  }
  0x5e   : > { %206 = sbr.rel (%p1996_p8) target bundleno = 430 (0x1ae), region = 36  ;;  %s2137_s8 = sand.u32 (!%p1996_p8), 1, %s1912_s16  }
  0x5f   : > { %s1430_s10 = sshll.u32 (!%p1996_p8), %s2137_s8, 8  ;;  %s209_s24 = scalar_lea.sflag (!%p1996_p8), [#allocation3], %s2137_s8 }
  0x60   : > { %s2143_s25 = scalar_lea.vmem (!%p1996_p8), [#allocation2], %s1430_s10  ;;  %p2577_p4 = scmp.ne.s32.totalorder (!%p1996_p8), %s2570_s21, 0 }
  0x65   : > { %1895 = dma.done.wait (%p2577_p4), %s209_s24, 4096  }
  0x66   : > { %1897 = vsyncadd (%p2577_p4), %s209_s24, 4294963200  ;;  %p2578_p5 = scmp.eq.s32.totalorder %s1977_s19, 0 }
  0x68   : > { %1899 = dma.done.wait (%p2578_p5), [#allocation6], 4096   ;;  %p2579_p8 = pmov %p2578_p5 }
  0x69   : > { %v279_v0 = vld [vmem:[#allocation5] sm:$0xff]  ;;  %v280_v1 = vld [vmem:[#allocation5 + $0x8] sm:$0xff]  ;;  %v281_v5 = vld [vmem:[#allocation5 + $0x10] sm:$0xff]  ;;  %vm767_vm0 = vcmask 1041409   ;;  %vm769_vm1 = vcmask 1042434   ;;  %vm771_vm2 = vcmask 1043459  }
  0x6a   : > { %1901 = vsyncadd (%p2579_p8), [#allocation6], 4294963200  ;;  %v712_v2 = vld [vmem:[#allocation7] sm:$0xff]  ;;  %v1628_v3 = vpack.c.bf16 %v280_v1, %v279_v0  ;;  %v713_v4 = vld [vmem:[#allocation7 + $0x8] sm:$0xff]  ;;  %vm773_vm3 = vcmask 1044484   ;;  %vm775_vm4 = vcmask 1045509  }
  0x6b   : > { %v282_v6 = vld [vmem:[#allocation5 + $0x18] sm:$0xff]  ;;  %v1660_v7 = vpack.c.bf16 %v713_v4, %v712_v2  ;;  %v714_v9 = vld [vmem:[#allocation7 + $0x10] sm:$0xff]  ;;  %v283_v11 = vld [vmem:[#allocation5 + $0x20] sm:$0xff]  ;;  %vm777_vm5 = vcmask 1046534   ;;  %vm779_vm6 = vcmask 1047559   ;;  %s2433_s11 = scalar_lea.vmem [#allocation8], %s1430_s10 }
  0x6c   : > { %v1632_v8 = vpack.c.bf16 %v282_v6, %v281_v5  ;;  %v715_v10 = vld [vmem:[#allocation7 + $0x18] sm:$0xff]  ;;  %1629 = vmatprep.subr.bf16.mxu0 %v1628_v3  ;;  %v284_v13 = vld [vmem:[#allocation5 + $0x28] sm:$0xff]  ;;  %v716_v14 = vld [vmem:[#allocation7 + $0x20] sm:$0xff]  ;;  %s1441_s12 = sshll.u32 %s1977_s19, 12  ;;  %s1329_s30 = sshll.u32 %s2433_s11, 4  ;;  %s2516_s30 = int_to_ptr.vmem [resolvable:$true] %s1329_s30 }
  0x6d   : > { %v1664_v12 = vpack.c.bf16 %v715_v10, %v714_v9  ;;  %v717_v15 = vld [vmem:[#allocation7 + $0x28] sm:$0xff]  ;;  %1661 = vmatprep.subr.bf16.mxu1 %v1660_v7  ;;  %1631 = vmatpush3.bf16.msra.mxu0 %v1628_v3  ;;  %v285_v16 = vld [vmem:[#allocation5 + $0x30] sm:$0xff]  ;;  %v286_v17 = vld [vmem:[#allocation5 + $0x38] sm:$0xff]  ;;  %v1636_v19 = vpack.c.bf16 %v284_v13, %v283_v11  ;;  %s2514_s28 = scalar_lea.hbm %s2566_s4, %s1441_s12  ;;  %s1316_s19 = scalar_lea.sflag [#allocation4], %s2137_s8 }
  0x6e   : > { %v718_v18 = vld [vmem:[#allocation7 + $0x30] sm:$0xff]  ;;  %1663 = vmatpush3.bf16.msra.mxu1 %v1660_v7  ;;  %1633 = vmatprep.subr.bf16.mxu0 %v1632_v8  ;;  %v719_v20 = vld [vmem:[#allocation7 + $0x38] sm:$0xff]  ;;  %v287_v21 = vld [vmem:[#allocation5 + $0x40] sm:$0xff]  ;;  %v1668_v23 = vpack.c.bf16 %v717_v15, %v716_v14  ;;  %v1640_v33 = vpack.c.bf16 %v286_v17, %v285_v16  ;;  %s1850_s27 = scalar_lea.vmem %s2516_s30, 4096  ;;  %p2580_p0 = scmp.ne.s32.totalorder %s2575_s13, 0 }
  0x6f   : > { %v288_v22 = vld [vmem:[#allocation5 + $0x48] sm:$0xff]  ;;  %1665 = vmatprep.subr.bf16.mxu1 %v1664_v12  ;;  %v720_v24 = vld [vmem:[#allocation7 + $0x40] sm:$0xff]  ;;  %v289_v26 = vld [vmem:[#allocation5 + $0x50] sm:$0xff]  ;;  %v1672_v34 = vpack.c.bf16 %v719_v20, %v718_v18  ;;  %p1851_p11 = scmp.ne.s32.totalorder %s2516_s30, %s1850_s27  ;;  %s1928_s20 = smov [#allocation8]  }
  0x70   : > { %v721_v25 = vld [vmem:[#allocation7 + $0x48] sm:$0xff]  ;;  %v290_v27 = vld [vmem:[#allocation5 + $0x58] sm:$0xff]  ;;  %v722_v28 = vld [vmem:[#allocation7 + $0x50] sm:$0xff]  ;;  %v2153_v38 = vpack.c.bf16 %v288_v22, %v287_v21  ;;  %s1854_s29 = sshll.u32 %s1928_s20, 4  ;;  %s1855_s29 = int_to_ptr.vmem [resolvable:$false] %s1854_s29 }
  0x71   : > { %v723_v29 = vld [vmem:[#allocation7 + $0x58] sm:$0xff]  ;;  %1635 = vmatpush3.bf16.msra.mxu0 %v1632_v8  ;;  %v291_v30 = vld [vmem:[#allocation5 + $0x60] sm:$0xff]  ;;  %v292_v31 = vld [vmem:[#allocation5 + $0x68] sm:$0xff]  ;;  %v2155_v39 = vpack.c.bf16 %v721_v25, %v720_v24  ;;  %v2157_v40 = vpack.c.bf16 %v290_v27, %v289_v26  ;;  %p1852_p2 = pnand %p1851_p11, %p2580_p0  ;;  %s1856_s5 = scalar_lea.vmem %s1855_s29, 8192 }
  0x72   : > { %v724_v32 = vld [vmem:[#allocation7 + $0x60] sm:$0xff]  ;;  %1667 = vmatpush3.bf16.msra.mxu1 %v1664_v12  ;;  %1637 = vmatprep.subr.bf16.mxu0 %v1636_v19  ;;  %v725_v35 = vld [vmem:[#allocation7 + $0x68] sm:$0xff]  ;;  %v293_v36 = vld [vmem:[#allocation5 + $0x70] sm:$0xff]  ;;  %v2159_v41 = vpack.c.bf16 %v723_v29, %v722_v28  ;;  %v2162_v45 = vpack.c.bf16 %v292_v31, %v291_v30  ;;  %p1857_p7 = scmp.lt.s32.totalorder %s2516_s30, %s1855_s29  ;;  %p1858_p9 = scmp.lt.s32.totalorder %s1856_s5, %s1850_s27 }
  0x73   : > { %v294_v37 = vld [vmem:[#allocation5 + $0x78] sm:$0xff]  ;;  %1669 = vmatprep.subr.bf16.mxu1 %v1668_v23  ;;  %v726_v42 = vld [vmem:[#allocation7 + $0x70] sm:$0xff]  ;;  %v247_v44 = vld [vmem:[%s2143_s25] sm:$0xff]  ;;  %v2164_v46 = vpack.c.bf16 %v725_v35, %v724_v32  ;;  %p1853_p3 = pneg %p1852_p2 }
  0x74   : > { %v727_v43 = vld [vmem:[#allocation7 + $0x78] sm:$0xff]  ;;  %v2166_v47 = vpack.c.bf16 %v294_v37, %v293_v36  ;;  %v2169_v48 = vld [vmem:[%s2143_s25 + $0x8] sm:$0xff]  ;;  %1542 = vmatprep.mubr.f32.mxu0 %v247_v44  ;;  %v520_v49 = vrot.slane %v247_v44, 4  ;;  %v2172_v50 = vld [vmem:[%s2143_s25 + $0x10] sm:$0xff]  ;;  %p1859_p12 = por %p1858_p9, %p1857_p7 }
  0x75   : > { %v2175_v51 = vld [vmem:[%s2143_s25 + $0x18] sm:$0xff]  ;;  %1639 = vmatpush3.bf16.msra.mxu0 %v1636_v19  ;;  %v2177_v52 = vpack.c.bf16 %v727_v43, %v726_v42  ;;  %v526_v53 = vrot.slane %v2169_v48, 4  ;;  %v2181_v54 = vld [vmem:[%s2143_s25 + $0x20] sm:$0xff]  ;;  %v2184_v55 = vld [vmem:[%s2143_s25 + $0x28] sm:$0xff]  ;;  %v532_v57 = vrot.slane %v2172_v50, 4 }
  0x76   : > { %v2187_v56 = vld [vmem:[%s2143_s25 + $0x30] sm:$0xff]  ;;  %v538_v58 = vrot.slane %v2175_v51, 4  ;;  %1671 = vmatpush3.bf16.msra.mxu1 %v1668_v23  ;;  %1641 = vmatprep.subr.bf16.mxu0 %v1640_v33  ;;  %v521_v59 = vadd.f32 %v520_v49, %v247_v44  ;;  %v2192_v60 = vld [vmem:[%s2143_s25 + $0x38] sm:$0xff]  ;;  %v544_v61 = vrot.slane %v2181_v54, 4  ;;  %v550_v62 = vrot.slane %v2184_v55, 4  ;;  %v2209_v28 = vld [vmem:[%s2143_s25 + $0x40] sm:$0xff]  ;;  %p1860_p1 = pnand %p1859_p12, %p1853_p3 }
  0x77   : > { %v556_v63 = vrot.slane %v2187_v56, 4  ;;  %1673 = vmatprep.subr.bf16.mxu1 %v1672_v34  ;;  %v527_v0 = vadd.f32 %v526_v53, %v2169_v48  ;;  %v533_v1 = vadd.f32 %v532_v57, %v2172_v50  ;;  %v562_v3 = vrot.slane %v2192_v60, 4  ;;  %v2221_v42 = vld [vmem:[%s2143_s25 + $0x58] sm:$0xff]  ;;  %v2227_v53 = vld [vmem:[%s2143_s25 + $0x68] sm:$0xff] }
  0x78   : > { %v539_v2 = vadd.f32 %v538_v58, %v2175_v51  ;;  %v522_v4 = vrot.slane %v521_v59, 2  ;;  %v545_v5 = vadd.f32 %v544_v61, %v2181_v54  ;;  %v551_v6 = vadd.f32 %v550_v62, %v2184_v55 }
  0x79   : > { %v557_v7 = vadd.f32 %v556_v63, %v2187_v56  ;;  %1643 = vmatpush3.bf16.msra.mxu0 %v1640_v33  ;;  %v528_v8 = vrot.slane %v527_v0, 2  ;;  %v534_v9 = vrot.slane %v533_v1, 2  ;;  %v563_v11 = vadd.f32 %v562_v3, %v2192_v60  ;;  %v2214_v33 = vld [vmem:[%s2143_s25 + $0x48] sm:$0xff] }
  0x7a   : > { %v540_v10 = vrot.slane %v539_v2, 2  ;;  %1675 = vmatpush3.bf16.msra.mxu1 %v1672_v34  ;;  %1645 = vmatprep.subr.bf16.mxu0 %v2153_v38  ;;  %v523_v12 = vadd.f32 %v522_v4, %v521_v59  ;;  %v546_v13 = vrot.slane %v545_v5, 2  ;;  %v552_v14 = vrot.slane %v551_v6, 2  ;;  %v2217_v34 = vld [vmem:[%s2143_s25 + $0x50] sm:$0xff] }
  0x7b   : > { %v558_v15 = vrot.slane %v557_v7, 2  ;;  %1677 = vmatprep.subr.bf16.mxu1 %v2155_v39  ;;  %v529_v16 = vadd.f32 %v528_v8, %v527_v0  ;;  %v535_v17 = vadd.f32 %v534_v9, %v533_v1  ;;  %v564_v19 = vrot.slane %v563_v11, 2 }
  0x7c   : > { %v541_v18 = vadd.f32 %v540_v10, %v539_v2  ;;  %v524_v20 = vrot.slane %v523_v12, 1  ;;  %v547_v21 = vadd.f32 %v546_v13, %v545_v5  ;;  %v553_v22 = vadd.f32 %v552_v14, %v551_v6  ;;  %v2251_v10 = vld [vmem:[%s2143_s25 + $0x70] sm:$0xff] }
  0x7d   : > { %v559_v23 = vadd.f32 %v558_v15, %v557_v7  ;;  %1647 = vmatpush3.bf16.msra.mxu0 %v2153_v38  ;;  %v530_v24 = vrot.slane %v529_v16, 1  ;;  %v536_v25 = vrot.slane %v535_v17, 1  ;;  %v565_v27 = vadd.f32 %v564_v19, %v563_v11  ;;  %v2258_v15 = vld [vmem:[%s2143_s25 + $0x78] sm:$0xff] }
  0x7e   : > { %v542_v26 = vrot.slane %v541_v18, 1  ;;  %1679 = vmatpush3.bf16.msra.mxu1 %v2155_v39  ;;  %1649 = vmatprep.subr.bf16.mxu0 %v2157_v40  ;;  %v525_v29 = vadd.f32 %v524_v20, %v523_v12  ;;  %v548_v30 = vrot.slane %v547_v21, 1  ;;  %v554_v31 = vrot.slane %v553_v22, 1  ;;  %v2224_v39 = vld [vmem:[%s2143_s25 + $0x60] sm:$0xff] }
  0x7f   : > { %v560_v32 = vrot.slane %v559_v23, 1  ;;  %1681 = vmatprep.subr.bf16.mxu1 %v2159_v41  ;;  %v531_v35 = vadd.f32 %v530_v24, %v529_v16  ;;  %v537_v36 = vadd.f32 %v536_v25, %v535_v17  ;;  %v566_v38 = vrot.slane %v565_v27, 1 }
  0x80   : > { %v543_v37 = vadd.f32 %v542_v26, %v541_v18  ;;  %v549_v43 = vadd.f32 %v548_v30, %v547_v21  ;;  %v555_v44 = vadd.f32 %v554_v31, %v553_v22  ;;  %v568_v57 = vrot.slane %v2209_v28, 4  ;;  %v2266_v30 = vld [vmem:[%s2143_s25 + $0x80] sm:$0xff] }
  0x81   : > { %v561_v49 = vadd.f32 %v560_v32, %v559_v23  ;;  %1651 = vmatpush3.bf16.msra.mxu0 %v2157_v40  ;;  %v768_v58 = vsel %vm767_vm0, %v531_v35, %v525_v29  ;;  %v567_v59 = vadd.f32 %v566_v38, %v565_v27  ;;  %v574_v61 = vrot.slane %v2214_v33, 4 }
  0x82   : > { %v580_v62 = vrot.slane %v2217_v34, 4  ;;  %1683 = vmatpush3.bf16.msra.mxu1 %v2159_v41  ;;  %1653 = vmatprep.subr.bf16.mxu0 %v2162_v45  ;;  %v770_v63 = vsel %vm769_vm1, %v537_v36, %v768_v58  ;;  %v569_v0 = vadd.f32 %v568_v57, %v2209_v28  ;;  %v586_v1 = vrot.slane %v2221_v42, 4 }
  0x83   : > { %v592_v40 = vrot.slane %v2224_v39, 4  ;;  %1685 = vmatprep.subr.bf16.mxu1 %v2164_v46  ;;  %v772_v2 = vsel %vm771_vm2, %v543_v37, %v770_v63  ;;  %v575_v3 = vadd.f32 %v574_v61, %v2214_v33  ;;  %v598_v4 = vrot.slane %v2227_v53, 4  ;;  %v2271_v37 = vld [vmem:[%s2143_s25 + $0x88] sm:$0xff] }
  0x84   : > { %v581_v41 = vadd.f32 %v580_v62, %v2217_v34  ;;  %v774_v5 = vsel %vm773_vm3, %v549_v43, %v772_v2  ;;  %v570_v6 = vrot.slane %v569_v0, 2  ;;  %v587_v7 = vadd.f32 %v586_v1, %v2221_v42 }
  0x85   : > { %v593_v8 = vadd.f32 %v592_v40, %v2224_v39  ;;  %1655 = vmatpush3.bf16.msra.mxu0 %v2162_v45  ;;  %v776_v9 = vsel %vm775_vm4, %v555_v44, %v774_v5  ;;  %v576_v11 = vrot.slane %v575_v3, 2  ;;  %v599_v13 = vadd.f32 %v598_v4, %v2227_v53  ;;  %v2290_v5 = vld [vmem:[%s2143_s25 + $0xa0] sm:$0xff] }
  0x86   : > { %v582_v12 = vrot.slane %v581_v41, 2  ;;  %1687 = vmatpush3.bf16.msra.mxu1 %v2164_v46  ;;  %1657 = vmatprep.subr.bf16.mxu0 %v2166_v47  ;;  %v778_v14 = vsel %vm777_vm5, %v561_v49, %v776_v9  ;;  %v571_v16 = vadd.f32 %v570_v6, %v569_v0  ;;  %v588_v17 = vrot.slane %v587_v7, 2  ;;  %v2275_v49 = vld [vmem:[%s2143_s25 + $0x90] sm:$0xff]  ;;  %v2297_v9 = vld [vmem:[%s2143_s25 + $0xa8] sm:$0xff] }
  0x87   : > { %v594_v18 = vrot.slane %v593_v8, 2  ;;  %1689 = vmatprep.subr.bf16.mxu1 %v2177_v52  ;;  %v780_v45 = vsel %vm779_vm6, %v567_v59, %v778_v14  ;;  %v577_v19 = vadd.f32 %v576_v11, %v575_v3  ;;  %v600_v21 = vrot.slane %v599_v13, 2  ;;  %v2279_v59 = vld [vmem:[%s2143_s25 + $0x98] sm:$0xff] }
  0x88   : > { %v583_v20 = vadd.f32 %v582_v12, %v581_v41  ;;  %1622 = vmatprep.mubr.f32.mxu1 %v780_v45  ;;  %v572_v46 = vrot.slane %v571_v16, 1  ;;  %v589_v22 = vadd.f32 %v588_v17, %v587_v7  ;;  %v604_v24 = vrot.slane %v2251_v10, 4 }
  0x89   : > { %v595_v23 = vadd.f32 %v594_v18, %v593_v8  ;;  %1659 = vmatpush3.bf16.msra.mxu0 %v2166_v47  ;;  %v578_v25 = vrot.slane %v577_v19, 1  ;;  %v601_v27 = vadd.f32 %v600_v21, %v599_v13  ;;  %v610_v29 = vrot.slane %v2258_v15, 4  ;;  %v2305_v21 = vld [vmem:[%s2143_s25 + $0xb0] sm:$0xff] }
  0x8a   : > { %v584_v26 = vrot.slane %v583_v20, 1  ;;  %1691 = vmatpush3.bf16.msra.mxu1 %v2177_v52  ;;  %v573_v31 = vadd.f32 %v572_v46, %v571_v16  ;;  %v590_v32 = vrot.slane %v589_v22, 1  ;;  %v605_v36 = vadd.f32 %v604_v24, %v2251_v10 }
  0x8b   : > { %v596_v35 = vrot.slane %v595_v23, 1  ;;  %v579_v38 = vadd.f32 %v578_v25, %v577_v19  ;;  %v602_v43 = vrot.slane %v601_v27, 1  ;;  %v611_v44 = vadd.f32 %v610_v29, %v2258_v15 }
  0x8c   : > { %v585_v47 = vadd.f32 %v584_v26, %v583_v20  ;;  %1543 = vmatmul.mubr.f32.vlgmr.msra.gmra.mrb[0].mxu0 %v2169_v48  ;;  %v591_v57 = vadd.f32 %v590_v32, %v589_v22  ;;  %v606_v52 = vrot.slane %v605_v36, 2  ;;  %v616_v61 = vrot.slane %v2266_v30, 4 }
  0x8d   : > { %v597_v58 = vadd.f32 %v596_v35, %v595_v23  ;;  %v603_v62 = vadd.f32 %v602_v43, %v601_v27  ;;  %v612_v63 = vrot.slane %v611_v44, 2  ;;  %v781_v0 = vsel %vm767_vm0, %v579_v38, %v573_v31  ;;  %1545 = vmatprep.mubr.f32.mxu0 %v2172_v50 }
  0x8e   : > { %v622_v1 = vrot.slane %v2271_v37, 4  ;;  %v607_v40 = vadd.f32 %v606_v52, %v605_v36  ;;  %v782_v48 = vsel %vm769_vm1, %v585_v47, %v781_v0  ;;  %v617_v2 = vadd.f32 %v616_v61, %v2266_v30  ;;  %v2318_v36 = vld [vmem:[%s2143_s25 + $0xc0] sm:$0xff] }
  0x8f   : > { %v628_v3 = vrot.slane %v2275_v49, 4  ;;  %v613_v41 = vadd.f32 %v612_v63, %v611_v44  ;;  %v783_v4 = vsel %vm771_vm2, %v591_v57, %v782_v48  ;;  %v634_v7 = vrot.slane %v2279_v59, 4  ;;  %v2325_v63 = vld [vmem:[%s2143_s25 + $0xc8] sm:$0xff] }
  0x90   : > { %v623_v6 = vadd.f32 %v622_v1, %v2271_v37  ;;  %v608_v8 = vrot.slane %v607_v40, 1  ;;  %v784_v50 = vsel %vm773_vm3, %v597_v58, %v783_v4  ;;  %1546 = vmatmul.mubr.f32.gmra.mrb[2].mxu0 %v2175_v51  ;;  %v618_v11 = vrot.slane %v617_v2, 2 }
  0x91   : > { %v629_v12 = vadd.f32 %v628_v3, %v2275_v49  ;;  %v614_v13 = vrot.slane %v613_v41, 1  ;;  %v785_v14 = vsel %vm775_vm4, %v603_v62, %v784_v50  ;;  %1548 = vmatprep.mubr.f32.mxu0 %v2181_v54  ;;  %v635_v17 = vadd.f32 %v634_v7, %v2279_v59  ;;  %v2311_v54 = vld [vmem:[%s2143_s25 + $0xb8] sm:$0xff]  ;;  %v2332_v3 = vld [vmem:[%s2143_s25 + $0xd0] sm:$0xff] }
  0x92   : > { %v624_v16 = vrot.slane %v623_v6, 2  ;;  %v609_v18 = vadd.f32 %v608_v8, %v607_v40  ;;  %v619_v45 = vadd.f32 %v618_v11, %v617_v2  ;;  %v640_v20 = vrot.slane %v2290_v5, 4 }
  0x93   : > { %v630_v19 = vrot.slane %v629_v12, 2  ;;  %v615_v51 = vadd.f32 %v614_v13, %v613_v41  ;;  %v636_v22 = vrot.slane %v635_v17, 2  ;;  %v646_v23 = vrot.slane %v2297_v9, 4 }
  0x94   : > { %v625_v46 = vadd.f32 %v624_v16, %v623_v6  ;;  %v786_v24 = vsel %vm777_vm5, %v609_v18, %v785_v14  ;;  %1549 = vmatmul.mubr.f32.gmra.mrb[4].mxu0 %v2184_v55  ;;  %v620_v25 = vrot.slane %v619_v45, 1  ;;  %v641_v27 = vadd.f32 %v640_v20, %v2290_v5  ;;  %v2336_v6 = vld [vmem:[%s2143_s25 + $0xd8] sm:$0xff] }
  0x95   : > { %v631_v26 = vadd.f32 %v630_v19, %v629_v12  ;;  %v787_v29 = vsel %vm779_vm6, %v615_v51, %v786_v24  ;;  %1551 = vmatprep.mubr.f32.mxu0 %v2187_v56  ;;  %v637_v32 = vadd.f32 %v636_v22, %v635_v17  ;;  %v647_v35 = vadd.f32 %v646_v23, %v2297_v9 }
  0x96   : > { %v626_v31 = vrot.slane %v625_v46, 1  ;;  %1623 = vmatmul.mubr.f32.vlgmr.msra.gmra.mrb[0].mxu1 %v787_v29  ;;  %v621_v38 = vadd.f32 %v620_v25, %v619_v45  ;;  %v642_v47 = vrot.slane %v641_v27, 2  ;;  %v652_v43 = vrot.slane %v2305_v21, 4  ;;  %v2345_v45 = vld [vmem:[%s2143_s25 + $0xe0] sm:$0xff] }
  0x97   : > { %v632_v55 = vrot.slane %v631_v26, 1  ;;  %v638_v57 = vrot.slane %v637_v32, 1  ;;  %v648_v58 = vrot.slane %v647_v35, 2  ;;  %v658_v52 = vrot.slane %v2311_v54, 4 }
  0x98   : > { %v627_v44 = vadd.f32 %v626_v31, %v625_v46  ;;  %1552 = vmatmul.mubr.f32.gmra.mrb[6].mxu0 %v2192_v60  ;;  %v643_v61 = vadd.f32 %v642_v47, %v641_v27  ;;  %v653_v62 = vadd.f32 %v652_v43, %v2305_v21  ;;  %v664_v0 = vrot.slane %v2318_v36, 4  ;;  %v2351_v46 = vld [vmem:[%s2143_s25 + $0xe8] sm:$0xff] }
  0x99   : > { %v633_v56 = vadd.f32 %v632_v55, %v631_v26  ;;  %1554 = vmatprep.mubr.f32.mxu0 %v2209_v28  ;;  %v639_v1 = vadd.f32 %v638_v57, %v637_v32  ;;  %v649_v40 = vadd.f32 %v648_v58, %v647_v35  ;;  %v659_v48 = vadd.f32 %v658_v52, %v2311_v54  ;;  %v2362_v55 = vld [vmem:[%s2143_s25 + $0xf8] sm:$0xff] }
  0x9a   : > { %v788_v2 = vsel %vm767_vm0, %v627_v44, %v621_v38  ;;  %v644_v41 = vrot.slane %v643_v61, 1  ;;  %v654_v60 = vrot.slane %v653_v62, 2  ;;  %v665_v7 = vadd.f32 %v664_v0, %v2318_v36  ;;  %v2359_v38 = vld [vmem:[%s2143_s25 + $0xf0] sm:$0xff] }
  0x9b   : > { %v789_v4 = vsel %vm769_vm1, %v633_v56, %v788_v2  ;;  %v650_v8 = vrot.slane %v649_v40, 1  ;;  %v660_v50 = vrot.slane %v659_v48, 2  ;;  %v670_v11 = vrot.slane %v2325_v63, 4 }
  0x9c   : > { %v790_v28 = vsel %vm771_vm2, %v639_v1, %v789_v4  ;;  %1555 = vmatmul.mubr.f32.gmra.mrb[8].mxu0 %v2214_v33  ;;  %v645_v12 = vadd.f32 %v644_v41, %v643_v61  ;;  %v655_v13 = vadd.f32 %v654_v60, %v653_v62  ;;  %v666_v14 = vrot.slane %v665_v7, 2 }
  0x9d   : > { %v676_v16 = vrot.slane %v2332_v3, 4  ;;  %1557 = vmatprep.mubr.f32.mxu0 %v2217_v34  ;;  %v651_v17 = vadd.f32 %v650_v8, %v649_v40  ;;  %v661_v18 = vadd.f32 %v660_v50, %v659_v48  ;;  %v671_v19 = vadd.f32 %v670_v11, %v2325_v63 }
  0x9e   : > { %v682_v20 = vrot.slane %v2336_v6, 4  ;;  %v656_v51 = vrot.slane %v655_v13, 1  ;;  %v791_v33 = vsel %vm773_vm3, %v645_v12, %v790_v28  ;;  %v667_v22 = vadd.f32 %v666_v14, %v665_v7 }
  0x9f   : > { %v677_v23 = vadd.f32 %v676_v16, %v2332_v3  ;;  %v662_v24 = vrot.slane %v661_v18, 1  ;;  %v792_v34 = vsel %vm775_vm4, %v651_v17, %v791_v33  ;;  %v672_v25 = vrot.slane %v671_v19, 2 }
  0xa0   : > { %v683_v26 = vadd.f32 %v682_v20, %v2336_v6  ;;  %1558 = vmatmul.mubr.f32.gmra.mrb[10].mxu0 %v2221_v42  ;;  %v657_v27 = vadd.f32 %v656_v51, %v655_v13  ;;  %v668_v29 = vrot.slane %v667_v22, 1  ;;  %v688_v32 = vrot.slane %v2345_v45, 4 }
  0xa1   : > { %v678_v31 = vrot.slane %v677_v23, 2  ;;  %v663_v35 = vadd.f32 %v662_v24, %v661_v18  ;;  %v673_v47 = vadd.f32 %v672_v25, %v671_v19  ;;  %v694_v44 = vrot.slane %v2351_v46, 4  ;;  %1560 = vmatprep.mubr.f32.mxu0 %v2224_v39 }
  0xa2   : > { %v684_v43 = vrot.slane %v683_v26, 2  ;;  %v793_v57 = vsel %vm777_vm5, %v657_v27, %v792_v34  ;;  %v669_v58 = vadd.f32 %v668_v29, %v667_v22  ;;  %v689_v52 = vadd.f32 %v688_v32, %v2345_v45 }
  0xa3   : > { %v679_v42 = vadd.f32 %v678_v31, %v677_v23  ;;  %v794_v56 = vsel %vm779_vm6, %v663_v35, %v793_v57  ;;  %v674_v61 = vrot.slane %v673_v47, 1  ;;  %v695_v0 = vadd.f32 %v694_v44, %v2351_v46 }
  0xa4   : > { %v685_v62 = vadd.f32 %v684_v43, %v683_v26  ;;  %1625 = vmatprep.mubr.f32.mxu1 %v794_v56  ;;  %v690_v40 = vrot.slane %v689_v52, 2  ;;  %v700_v48 = vrot.slane %v2359_v38, 4  ;;  %v706_v2 = vrot.slane %v2362_v55, 4  ;;  %1561 = vmatmul.mubr.f32.gmra.mrb[12].mxu0 %v2227_v53 }
  0xa5   : > { %v680_v1 = vrot.slane %v679_v42, 1  ;;  %v675_v39 = vadd.f32 %v674_v61, %v673_v47  ;;  %v696_v60 = vrot.slane %v695_v0, 2  ;;  %1563 = vmatprep.mubr.f32.mxu0 %v2251_v10 }
  0xa6   : > { %v686_v41 = vrot.slane %v685_v62, 1  ;;  %v691_v7 = vadd.f32 %v690_v40, %v689_v52  ;;  %v701_v8 = vadd.f32 %v700_v48, %v2359_v38  ;;  %v707_v50 = vadd.f32 %v706_v2, %v2362_v55 }
  0xa7   : > { %v681_v4 = vadd.f32 %v680_v1, %v679_v42  ;;  %v697_v11 = vadd.f32 %v696_v60, %v695_v0  ;;  %v795_v12 = vsel %vm767_vm0, %v675_v39, %v669_v58 }
  0xa8   : > { %v687_v28 = vadd.f32 %v686_v41, %v685_v62  ;;  %v692_v13 = vrot.slane %v691_v7, 1  ;;  %v702_v14 = vrot.slane %v701_v8, 2  ;;  %v708_v16 = vrot.slane %v707_v50, 2  ;;  %1564 = vmatmul.mubr.f32.gmra.mrb[14].mxu0 %v2258_v15 }
  0xa9   : > { %v796_v53 = vsel %vm769_vm1, %v681_v4, %v795_v12  ;;  %v698_v17 = vrot.slane %v697_v11, 1  ;;  %1566 = vmatprep.mubr.f32.mxu0 %v2266_v30 }
  0xaa   : > { %v797_v10 = vsel %vm771_vm2, %v687_v28, %v796_v53  ;;  %v693_v18 = vadd.f32 %v692_v13, %v691_v7  ;;  %v703_v19 = vadd.f32 %v702_v14, %v701_v8  ;;  %v709_v20 = vadd.f32 %v708_v16, %v707_v50 }
  0xab   : > { %v699_v51 = vadd.f32 %v698_v17, %v697_v11 }
  0xac   : > { %v704_v33 = vrot.slane %v703_v19, 1  ;;  %v710_v22 = vrot.slane %v709_v20, 1  ;;  %v798_v23 = vsel %vm773_vm3, %v693_v18, %v797_v10  ;;  %1567 = vmatmul.mubr.f32.gmra.mrb[16].mxu0 %v2271_v37 }
  0xad   : > { %v799_v24 = vsel %vm775_vm4, %v699_v51, %v798_v23  ;;  %1569 = vmatprep.mubr.f32.mxu0 %v2275_v49 }
  0xae   : > { %v705_v15 = vadd.f32 %v704_v33, %v703_v19  ;;  %v711_v34 = vadd.f32 %v710_v22, %v709_v20 }
  0xb0   : > { %v800_v25 = vsel %vm777_vm5, %v705_v15, %v799_v24  ;;  %1570 = vmatmul.mubr.f32.gmra.mrb[18].mxu0 %v2279_v59  ;;  %v1927_v59 = vmov 1966171168  }
  0xb1   : > { %v801_v30 = vsel %vm779_vm6, %v711_v34, %v800_v25  ;;  %1572 = vmatprep.mubr.f32.mxu0 %v2290_v5  ;;  %v897_v5 = vunpack.c.l.s4 %v1927_v59 }
  0xb2   : > { %1626 = vmatmul.mubr.f32.gmra.mrb[2].mxu1 %v801_v30 }
  0xb4   : > { %1573 = vmatmul.mubr.f32.gmra.mrb[20].mxu0 %v2297_v9  ;;  %v899_v9 = vlaneseq }
  0xb5   : > { %1575 = vmatprep.mubr.f32.mxu0 %v2305_v21 }
  0xb8   : > { %1576 = vmatmul.mubr.f32.gmra.mrb[22].mxu0 %v2311_v54 }
  0xb9   : > { %1578 = vmatprep.mubr.f32.mxu0 %v2318_v36  ;;  %v898_v36 = vunpack.c.0.s8 %v897_v5 }
  0xbc   : > { %1579 = vmatmul.mubr.f32.gmra.mrb[24].mxu0 %v2325_v63  ;;  %v900_v63 = vshrl.u32 %v899_v9, 7 }
  0xbd   : > { %1581 = vmatprep.mubr.f32.mxu0 %v2332_v3 }
  0xbe   : > { %v2407_v26 = vsub.s32 %v898_v36, %v900_v63  ;;  %v2415_v44 = vsub.s32 0, %v900_v63 }
  0xc0   : > { %1582 = vmatmul.mubr.f32.gmra.mrb[26].mxu0 %v2336_v6  ;;  %v2405_v6 = vld [vmem:[%s2565_s3] ss:$0 sm:$0xff] }
  0xc1   : > { %1584 = vmatprep.mubr.f32.mxu0 %v2345_v45 }
  0xc4   : > { %1585 = vmatmul.mubr.f32.gmra.mrb[28].mxu0 %v2351_v46 }
  0xc5   : > { %1587 = vmatprep.mubr.f32.mxu0 %v2359_v38 }
  0xc8   : > { %1588 = vmatmul.mubr.f32.gmra.mrb[30].mxu0 %v2362_v55 }
 0x15f   : > { %v1544_v37 = vpop.f32.mrb[0].mxu0 }
 0x160   : > { %v361_v49 = vpop.f32.mrb[1].mxu0 }
 0x163   : > { %v1547_v21 = vpop.f32.mrb[2].mxu0 }
 0x164   : > { %v371_v54 = vpop.f32.mrb[3].mxu0 }
 0x167   : > { %v2400_v3 = vpop.f32.mrb[4].mxu0 }
 0x168   : > { %v381_v45 = vpop.f32.mrb[5].mxu0 }
 0x169   : > { %v1624_v46 = vpop.f32.mrb[0].mxu1 }
 0x16a   : > { %v878_v27 = vadd.f32 %v1624_v46, %v2405_v6  ;;  %v872_v29 = vpop.f32.mrb[1].mxu1 }
 0x16b   : > { %v873_v31 = vadd.f32 %v2405_v6, %v872_v29  ;;  %v2411_v32 = vpop.f32.mrb[6].mxu0 }
 0x16c   : > { %v944_v35 = vcombine.high %v878_v27, %v878_v27  ;;  %v951_v38 = vrot.slane %v878_v27, %v2407_v26  ;;  %v391_v55 = vpop.f32.mrb[7].mxu0 }
 0x16d   : > { %v895_v47 = vcombine.high %v873_v31, %v873_v31  ;;  %v902_v43 = vrot.slane %v873_v31, %v2407_v26 }
 0x16e   : > { %v958_v57 = vrot.slane %v944_v35, %v2407_v26  ;;  %v959_v58 = vcombine.high %v951_v38, %v951_v38  ;;  %v967_v42 = vrot.slane %v951_v38, %v2407_v26 }
 0x16f   : > { %v909_v52 = vrot.slane %v895_v47, %v2407_v26  ;;  %v910_v56 = vcombine.high %v902_v43, %v902_v43  ;;  %v918_v61 = vrot.slane %v902_v43, %v2407_v26  ;;  %v1556_v62 = vpop.f32.mrb[8].mxu0 }
 0x170   : > { %v981_v0 = vrot.slane %v959_v58, %v2407_v26  ;;  %v401_v1 = vpop.f32.mrb[9].mxu0  ;;  %v1126_v40 = vrot.slane %v967_v42, %v2415_v44  ;;  %v989_v48 = vcombine.high %v967_v42, %v967_v42  ;;  %v960_v2 = vcombine.high %v958_v57, %v958_v57 }
 0x171   : > { %v1094_v39 = vrot.slane %v918_v61, %v2415_v44  ;;  %v932_v41 = vrot.slane %v910_v56, %v2407_v26  ;;  %v940_v60 = vcombine.high %v918_v61, %v918_v61  ;;  %v911_v4 = vcombine.high %v909_v52, %v909_v52 }
 0x172   : > { %v925_v7 = vrot.slane %v909_v52, %v2407_v26  ;;  %v1130_v8 = vrot.slane %v981_v0, %v2415_v44  ;;  %v1259_v50 = vadd.f32 %v1126_v40, %v401_v1  ;;  %v991_v28 = vcombine.high %v981_v0, %v981_v0 }
 0x173   : > { %v1251_v11 = vadd.f32 %v1094_v39, %v361_v49  ;;  %v942_v12 = vcombine.high %v932_v41, %v932_v41  ;;  %v1098_v13 = vrot.slane %v932_v41, %v2415_v44  ;;  %v1102_v14 = vrot.slane %v940_v60, %v2415_v44  ;;  %v1559_v16 = vpop.f32.mrb[10].mxu0 }
 0x174   : > { %v939_v53 = vrot.slane %v911_v4, %v2407_v26  ;;  %v1110_v17 = vrot.slane %v925_v7, %v2415_v44  ;;  %v941_v10 = vcombine.high %v925_v7, %v925_v7  ;;  %v1260_v18 = vadd.f32 %v1556_v62, %v1130_v8  ;;  %1291 = vst [vmem:[%s2433_s11 + $0x40] sm:$0xff] %v1259_v50  ;;  %v411_v19 = vpop.f32.mrb[11].mxu0 }
 0x175   : > { %1283 = vst [vmem:[%s2433_s11] sm:$0xff] %v1251_v11  ;;  %v1106_v20 = vrot.slane %v942_v12, %v2415_v44  ;;  %v1252_v51 = vadd.f32 %v1544_v37, %v1098_v13  ;;  %v1253_v33 = vadd.f32 %v1102_v14, %v371_v54  ;;  %v1138_v22 = vrot.slane %v991_v28, %v2415_v44 }
 0x176   : > { %v1114_v23 = vrot.slane %v939_v53, %v2415_v44  ;;  %v1255_v24 = vadd.f32 %v1110_v17, %v381_v45  ;;  %v943_v15 = vcombine.high %v939_v53, %v939_v53  ;;  %v1118_v34 = vrot.slane %v941_v10, %v2415_v44  ;;  %1292 = vst [vmem:[%s2433_s11 + $0x48] sm:$0xff] %v1260_v18 }
 0x177   : > { %v1254_v25 = vadd.f32 %v1547_v21, %v1106_v20  ;;  %1284 = vst [vmem:[%s2433_s11 + $0x8] sm:$0xff] %v1252_v51  ;;  %1285 = vst [vmem:[%s2433_s11 + $0x10] sm:$0xff] %v1253_v33  ;;  %v1262_v30 = vadd.f32 %v1559_v16, %v1138_v22  ;;  %v1134_v37 = vrot.slane %v989_v48, %v2415_v44  ;;  %v1562_v49 = vpop.f32.mrb[12].mxu0 }
 0x178   : > { %v988_v59 = vrot.slane %v960_v2, %v2407_v26  ;;  %v1256_v5 = vadd.f32 %v2400_v3, %v1114_v23  ;;  %1287 = vst [vmem:[%s2433_s11 + $0x20] sm:$0xff] %v1255_v24  ;;  %v1122_v9 = vrot.slane %v943_v15, %v2415_v44  ;;  %v1257_v54 = vadd.f32 %v1118_v34, %v391_v55  ;;  %v421_v36 = vpop.f32.mrb[13].mxu0 }
 0x179   : > { %v974_v21 = vrot.slane %v958_v57, %v2407_v26  ;;  %1286 = vst [vmem:[%s2433_s11 + $0x18] sm:$0xff] %v1254_v25  ;;  %1294 = vst [vmem:[%s2433_s11 + $0x58] sm:$0xff] %v1262_v30  ;;  %v1261_v63 = vadd.f32 %v1134_v37, %v411_v19 }
 0x17a   : > { %v1146_v45 = vrot.slane %v988_v59, %v2415_v44  ;;  %v992_v46 = vcombine.high %v988_v59, %v988_v59  ;;  %1288 = vst [vmem:[%s2433_s11 + $0x28] sm:$0xff] %v1256_v5  ;;  %v1258_v3 = vadd.f32 %v2411_v32, %v1122_v9  ;;  %1289 = vst [vmem:[%s2433_s11 + $0x30] sm:$0xff] %v1257_v54 }
 0x17b   : > { %v1142_v27 = vrot.slane %v974_v21, %v2415_v44  ;;  %v990_v29 = vcombine.high %v974_v21, %v974_v21  ;;  %1293 = vst [vmem:[%s2433_s11 + $0x50] sm:$0xff] %v1261_v63  ;;  %v1565_v35 = vpop.f32.mrb[14].mxu0 }
 0x17c   : > { %v1264_v31 = vadd.f32 %v1562_v49, %v1146_v45  ;;  %v1154_v38 = vrot.slane %v992_v46, %v2415_v44  ;;  %1290 = vst [vmem:[%s2433_s11 + $0x38] sm:$0xff] %v1258_v3  ;;  %v431_v47 = vpop.f32.mrb[15].mxu0 }
 0x17d   : > { %v1263_v55 = vadd.f32 %v1142_v27, %v421_v36  ;;  %v1150_v43 = vrot.slane %v990_v29, %v2415_v44 }
 0x17e   : > { %1296 = vst [vmem:[%s2433_s11 + $0x68] sm:$0xff] %v1264_v31  ;;  %v1266_v57 = vadd.f32 %v1565_v35, %v1154_v38 }
 0x17f   : > { %1295 = vst [vmem:[%s2433_s11 + $0x60] sm:$0xff] %v1263_v55  ;;  %v1265_v32 = vadd.f32 %v1150_v43, %v431_v47  ;;  %v1568_v58 = vpop.f32.mrb[16].mxu0 }
 0x180   : > { %1298 = vst [vmem:[%s2433_s11 + $0x78] sm:$0xff] %v1266_v57  ;;  %v441_v42 = vpop.f32.mrb[17].mxu0 }
 0x181   : > { %1297 = vst [vmem:[%s2433_s11 + $0x70] sm:$0xff] %v1265_v32 }
 0x183   : > { %v1571_v52 = vpop.f32.mrb[18].mxu0 }
 0x184   : > { %v451_v56 = vpop.f32.mrb[19].mxu0 }
 0x185   : > { %v1627_v61 = vpop.f32.mrb[2].mxu1 }
 0x186   : > { %v888_v62 = vadd.f32 %v1627_v61, %v2405_v6  ;;  %v882_v0 = vpop.f32.mrb[3].mxu1 }
 0x187   : > { %v883_v1 = vadd.f32 %v2405_v6, %v882_v0  ;;  %v1574_v40 = vpop.f32.mrb[20].mxu0 }
 0x188   : > { %v1042_v48 = vcombine.high %v888_v62, %v888_v62  ;;  %v1049_v2 = vrot.slane %v888_v62, %v2407_v26  ;;  %v461_v39 = vpop.f32.mrb[21].mxu0 }
 0x189   : > { %v993_v41 = vcombine.high %v883_v1, %v883_v1  ;;  %v1000_v60 = vrot.slane %v883_v1, %v2407_v26 }
 0x18a   : > { %v1056_v4 = vrot.slane %v1042_v48, %v2407_v26  ;;  %v1057_v7 = vcombine.high %v1049_v2, %v1049_v2  ;;  %v1065_v8 = vrot.slane %v1049_v2, %v2407_v26 }
 0x18b   : > { %v1007_v50 = vrot.slane %v993_v41, %v2407_v26  ;;  %v1008_v28 = vcombine.high %v1000_v60, %v1000_v60  ;;  %v1016_v11 = vrot.slane %v1000_v60, %v2407_v26  ;;  %v1577_v12 = vpop.f32.mrb[22].mxu0 }
 0x18c   : > { %v471_v6 = vpop.f32.mrb[23].mxu0  ;;  %v1079_v13 = vrot.slane %v1057_v7, %v2407_v26  ;;  %v1190_v14 = vrot.slane %v1065_v8, %v2415_v44  ;;  %v1087_v16 = vcombine.high %v1065_v8, %v1065_v8  ;;  %v1058_v53 = vcombine.high %v1056_v4, %v1056_v4 }
 0x18d   : > { %v1030_v17 = vrot.slane %v1008_v28, %v2407_v26  ;;  %v1158_v10 = vrot.slane %v1016_v11, %v2415_v44  ;;  %v1038_v18 = vcombine.high %v1016_v11, %v1016_v11  ;;  %v1009_v19 = vcombine.high %v1007_v50, %v1007_v50 }
 0x18e   : > { %v1023_v20 = vrot.slane %v1007_v50, %v2407_v26  ;;  %v1194_v51 = vrot.slane %v1079_v13, %v2415_v44  ;;  %v1089_v33 = vcombine.high %v1079_v13, %v1079_v13  ;;  %v1198_v22 = vrot.slane %v1087_v16, %v2415_v44 }
 0x18f   : > { %v1162_v23 = vrot.slane %v1030_v17, %v2415_v44  ;;  %v1267_v24 = vadd.f32 %v1158_v10, %v441_v42  ;;  %v1040_v15 = vcombine.high %v1030_v17, %v1030_v17  ;;  %v1166_v34 = vrot.slane %v1038_v18, %v2415_v44  ;;  %v1580_v25 = vpop.f32.mrb[24].mxu0 }
 0x190   : > { %v1037_v30 = vrot.slane %v1009_v19, %v2407_v26  ;;  %v1174_v37 = vrot.slane %v1023_v20, %v2415_v44  ;;  %v1039_v49 = vcombine.high %v1023_v20, %v1023_v20  ;;  %v1276_v59 = vadd.f32 %v1580_v25, %v1194_v51  ;;  %v481_v5 = vpop.f32.mrb[25].mxu0 }
 0x191   : > { %v1268_v9 = vadd.f32 %v1568_v58, %v1162_v23  ;;  %1299 = vst [vmem:[%s2433_s11 + $0x80] sm:$0xff] %v1267_v24  ;;  %v1170_v54 = vrot.slane %v1040_v15, %v2415_v44  ;;  %v1269_v36 = vadd.f32 %v1166_v34, %v451_v56  ;;  %v1275_v21 = vadd.f32 %v1190_v14, %v481_v5 }
 0x192   : > { %v1178_v63 = vrot.slane %v1037_v30, %v2415_v44  ;;  %v1271_v45 = vadd.f32 %v1174_v37, %v461_v39  ;;  %v1041_v46 = vcombine.high %v1037_v30, %v1037_v30  ;;  %v1182_v3 = vrot.slane %v1039_v49, %v2415_v44  ;;  %1308 = vst [vmem:[%s2433_s11 + $0xc8] sm:$0xff] %v1276_v59 }
 0x193   : > { %1300 = vst [vmem:[%s2433_s11 + $0x88] sm:$0xff] %v1268_v9  ;;  %v1270_v27 = vadd.f32 %v1571_v52, %v1170_v54  ;;  %1301 = vst [vmem:[%s2433_s11 + $0x90] sm:$0xff] %v1269_v36  ;;  %v1583_v29 = vpop.f32.mrb[26].mxu0  ;;  %v1202_v31 = vrot.slane %v1089_v33, %v2415_v44  ;;  %v1086_v35 = vrot.slane %v1058_v53, %v2407_v26 }
 0x194   : > { %1307 = vst [vmem:[%s2433_s11 + $0xc0] sm:$0xff] %v1275_v21  ;;  %v1072_v38 = vrot.slane %v1056_v4, %v2407_v26  ;;  %v1272_v55 = vadd.f32 %v1574_v40, %v1178_v63  ;;  %1303 = vst [vmem:[%s2433_s11 + $0xa0] sm:$0xff] %v1271_v45  ;;  %v1186_v47 = vrot.slane %v1041_v46, %v2415_v44  ;;  %v491_v57 = vpop.f32.mrb[27].mxu0 }
 0x195   : > { %v1273_v43 = vadd.f32 %v1182_v3, %v471_v6  ;;  %1302 = vst [vmem:[%s2433_s11 + $0x98] sm:$0xff] %v1270_v27  ;;  %v1278_v32 = vadd.f32 %v1583_v29, %v1202_v31  ;;  %v1277_v58 = vadd.f32 %v1198_v22, %v491_v57  ;;  %v1210_v42 = vrot.slane %v1086_v35, %v2415_v44 }
 0x196   : > { %v1206_v52 = vrot.slane %v1072_v38, %v2415_v44  ;;  %1304 = vst [vmem:[%s2433_s11 + $0xa8] sm:$0xff] %v1272_v55  ;;  %v1274_v26 = vadd.f32 %v1577_v12, %v1186_v47  ;;  %v1090_v56 = vcombine.high %v1086_v35, %v1086_v35  ;;  %v1088_v62 = vcombine.high %v1072_v38, %v1072_v38 }
 0x197   : > { %1305 = vst [vmem:[%s2433_s11 + $0xb0] sm:$0xff] %v1273_v43  ;;  %1310 = vst [vmem:[%s2433_s11 + $0xd8] sm:$0xff] %v1278_v32  ;;  %v1586_v61 = vpop.f32.mrb[28].mxu0 }
 0x198   : > { %1309 = vst [vmem:[%s2433_s11 + $0xd0] sm:$0xff] %v1277_v58  ;;  %1306 = vst [vmem:[%s2433_s11 + $0xb8] sm:$0xff] %v1274_v26  ;;  %v1280_v0 = vadd.f32 %v1586_v61, %v1210_v42  ;;  %v501_v1 = vpop.f32.mrb[29].mxu0  ;;  %v1218_v40 = vrot.slane %v1090_v56, %v2415_v44  ;;  %v1214_v39 = vrot.slane %v1088_v62, %v2415_v44 }
 0x199   : > { %v1279_v48 = vadd.f32 %v1206_v52, %v501_v1 }
 0x19a   : > { %1312 = vst [vmem:[%s2433_s11 + $0xe8] sm:$0xff] %v1280_v0 }
 0x19b   : > { %1311 = vst [vmem:[%s2433_s11 + $0xe0] sm:$0xff] %v1279_v48  ;;  %v1589_v2 = vpop.f32.mrb[30].mxu0 }
 0x19c   : > { %v1282_v41 = vadd.f32 %v1589_v2, %v1218_v40  ;;  %v511_v60 = vpop.f32.mrb[31].mxu0 }
 0x19d   : > { %v1281_v4 = vadd.f32 %v1214_v39, %v511_v60 }
 0x19e   : > { %1314 = vst [vmem:[%s2433_s11 + $0xf8] sm:$0xff] %v1282_v41 }
 0x19f   : > { %1313 = vst [vmem:[%s2433_s11 + $0xf0] sm:$0xff] %v1281_v4 }
 0x1a0   : > { %1863 = shalt.err (!%p1860_p1)
}
 0x1a1   : > { %s1864_s9 = scalar_lea.hbm %s2514_s28, 4096  ;;  %s1868_s25 = scalar_lea.hbm %s2566_s4, 8192 }
 0x1a2   : > { %p1865_p13 = scmp.ne.s32.totalorder %s2514_s28, %s1864_s9  ;;  %p1869_p4 = scmp.lt.u32.totalorder %s2514_s28, %s2566_s4 }
 0x1a3   : > { %p1870_p5 = scmp.lt.u32.totalorder %s1868_s25, %s1864_s9  ;;  %p1872_p11 = scmp.lt.u32.totalorder %s1864_s9, %s2514_s28 }
 0x1a4   : > { %p1866_p6 = pnand %p1865_p13, %p2580_p0 }
 0x1a5   : > { %p1871_p8 = por %p1870_p5, %p1869_p4 }
 0x1a6   : > { %p1867_p10 = pneg %p1866_p6 }
 0x1a7   : > { %p1873_p2 = por %p1872_p11, %p1871_p8 }
 0x1a9   : > { %p1874_p3 = pnand %p1873_p2, %p1867_p10 }
 0x1ab   : > { %1877 = shalt.err (!%p1874_p3)
}
 0x1ac   : > { %s1929_s11 = smov 128   ;;  %s1930_s12 = smov 8  }
 0x1ad   : > { %1702 = dma.vmem_to_hbm [thread:$0]  (%p2580_p0), %s2516_s30, 4096, %s2514_s28, %s1316_s19, %s1929_s11, %s1929_s11, %s1930_s12  }
 0x1ae PF: > { %s1344_s6 = sand.u32 1, %s1908_s15   ;;  %p2581_p7 = scmp.ne.s32.totalorder %s2571_s22, 0 }
 0x1af   : > { %p2582_p9 = scmp.ge.s32.totalorder %s1920_s18, 2  ;;  %s1345_s7 = scalar_lea.sflag [#allocation4], %s1344_s6 }
 0x1b1   : > { %p1716_p12 = pnand %p2582_p9, %p2581_p7 }
 0x1b3   : > { %1903 = dma.done.wait (!%p1716_p12), %s1345_s7, 4096  }
 0x1b4   : > { %1905 = vsyncadd (!%p1716_p12), %s1345_s7, 4294963200  ;;  %p18_p1 = scmp.ge.s32.totalorder %s2072_s26, 4   ;;  %s2583_s15 = smov %s1912_s16 }
 0x1b5   : > { %s2584_s16 = smov %s1916_s17  ;;  %s2585_s17 = smov %s2088_s14 }
 0x1b6   : > { %s2586_s18 = smov %s2072_s26  ;;  %20 = sbr.rel (!%p18_p1) target bundleno = 6 (0x6), region = 89 }
 0x1bd   :  { %1350 = vsyncpa [#allocation3], 1 }
 0x1be   :  { %1352 = vsyncpa [#allocation3 + $0x1], 1 }
 0x1bf   :  { %1353 = vsyncpa [#allocation6], 1 }
 0x1c0   :  { %1354 = vsyncpa [#allocation4], 1 }
 0x1c1   :  { %1356 = vsyncpa [#allocation4 + $0x1], 1 }

</bundles_post_ra>
